<compile_context>
chip_gen: v6e
topology: v6e:2x2x1
jax: 0.10.0
libtpu: 0.0.40
codegen_flags: <defaults>
</compile_context>

<pallas_src>
import jax
import jax.numpy as jnp
from jax.experimental import pallas as pl
from jax.experimental.pallas import tpu as pltpu


def _copy_param_kernel(v_hbm_ref, o_hbm_ref):
    # Whole hot path of TestSubModule.forward(): return self.v.
    # Both refs live in HBM (memory_space=pl.ANY), so the only data movement
    # is a single 24-byte HBM->HBM DMA — no HBM<->VMEM round trip.
    def body(sem):
        cp = pltpu.make_async_copy(v_hbm_ref, o_hbm_ref, sem)
        cp.start()
        cp.wait()

    pl.run_scoped(body, pltpu.SemaphoreType.DMA)


def test_submodule_forward_fast(v):
    """Recommended production path: forward() is the identity on the
    parameter, so the cheapest 'kernel' is no kernel at all."""
    return jnp.asarray(v)


def test_submodule_forward(v):
    """Pallas version, kept only as a custom-call / fusion anchor.

    grid=() (single invocation); input and output stay in HBM (pl.ANY) and the
    body performs one HBM->HBM DMA of the full (2, 3) array. No aliasing, no
    VMEM staging, no pipelining — the minimal-overhead form for this op.
    """
    nbytes = v.size * v.dtype.itemsize
    return pl.pallas_call(
        _copy_param_kernel,
        out_shape=jax.ShapeDtypeStruct(v.shape, v.dtype),
        in_specs=[pl.BlockSpec(memory_space=pl.ANY)],
        out_specs=pl.BlockSpec(memory_space=pl.ANY),
        cost_estimate=pl.CostEstimate(
            flops=0, transcendentals=0, bytes_accessed=2 * nbytes
        ),
    )(v)


if __name__ == "__main__":
    # Deterministic stand-in for torch.rand((2, 3)) in __init__.
    key = jax.random.PRNGKey(0)
    v = jax.random.uniform(key, (2, 3), dtype=jnp.float32)

    # Fast path (what production code should actually use).
    out_fast = jax.block_until_ready(test_submodule_forward_fast(v))

    # Pallas-kernel path (single HBM->HBM DMA, no VMEM round trip, no alias).
    out = jax.block_until_ready(test_submodule_forward(v))

    assert out.shape == (2, 3)
    assert out.dtype == jnp.float32
    assert bool(jnp.allclose(out, v)), "kernel output does not match parameter v"
    assert bool(jnp.allclose(out_fast, v)), "fast-path output does not match parameter v"

    print("KERNEL_OK")
</pallas_src>

<mosaic_0001>
module attributes {stable_mosaic.version = 11 : i64} {
  func.func @_copy_param_kernel(%arg0: memref<2x3xf32, #tpu.memory_space<any>>, %arg1: memref<2x3xf32, #tpu.memory_space<any>>) attributes {dimension_semantics = [], scalar_prefetch = 0 : i64, scratch_operands = 0 : i64, tpu.core_type = #tpu.core_type<tc>} {
    "tpu.region"() ({
      %0 = tpu.sem_alloc : memref<!tpu.dma_semaphore, #tpu.memory_space<semaphore_mem>>
      tpu.enqueue_dma source(%arg0 : memref<2x3xf32, #tpu.memory_space<any>>) target(%arg1 : memref<2x3xf32, #tpu.memory_space<any>>) target_semaphore(%0 : memref<!tpu.dma_semaphore, #tpu.memory_space<semaphore_mem>>)
      tpu.wait_dma2 semaphore(%0 : memref<!tpu.dma_semaphore, #tpu.memory_space<semaphore_mem>>) src(%arg0 : memref<2x3xf32, #tpu.memory_space<any>>) dst(%arg1 : memref<2x3xf32, #tpu.memory_space<any>>)
      tpu.yield
    }) : () -> ()
    return
  }
}

</mosaic_0001>

<bundles_post_ra>
// kernel: tpu_custom_call.1
= control target key start
LH: loop header
LB: loop body
LE: loop exit
PB: predicated region body
PF: predicated region fallthrough
CT: control target
= control target key end

     0   :  { %s21_s6 = smov [#allocation2]   ;;  %s22_s7 = smov 131072   ;;  %s40_s0 = inlined_call_operand.hbm [shape: f32[2,3], index: 0, kind: input, shape index: {}]   ;;  %s41_s1 = inlined_call_operand.hbm [shape: f32[2,3], index: 1, kind: output, shape index: {}]  }
   0x1   :  { %s23_s8 = smov 0  }
   0x2   :  { %12 = dma.general %s40_s0, 32, %s41_s1, %s21_s6, %s22_s7, [#allocation4], %s23_s8, 0  }
   0x3   :  { %19 = dma.done.wait [#allocation2], 32 }
   0x4   :  { %20 = vsyncadd [#allocation2], 4294967264 }

</bundles_post_ra>
